<compile_context>
chip_gen: v5e
topology: v5e:2x2
jax: 0.10.0
libtpu: 0.0.40
codegen_flags: <defaults>
</compile_context>

<pallas_src>
import functools

import jax
import jax.numpy as jnp
from jax import lax
from jax.experimental import pallas as pl
from jax.experimental.pallas import tpu as pltpu


def _round_up(x: int, m: int) -> int:
    return ((x + m - 1) // m) * m


# ----------------------------------------------------------------------------
# Pallas kernel: softmax over w-wide segments of a lane-dense (TR, k*w) tile
# ----------------------------------------------------------------------------
def _softmax_kernel(x_ref, o_ref, *, k: int, w: int):
    x = x_ref[...].astype(jnp.float32)            # in-kernel upcast (narrow HBM I/O)
    kw = k * w

    # Numerically-stable shift.  With lane packing (k > 1) we subtract the
    # packed-row max (>= every segment max); softmax is shift-invariant within
    # each segment so this is exact unless exp() underflows.  The clamp at -80
    # keeps every exp() a normal float, so segment sums are strictly positive
    # (no 0/0 -> NaN) even for adversarial inputs.
    m = jnp.max(x, axis=-1, keepdims=True)        # XLU cross-lane reduce
    e = jnp.exp(jnp.maximum(x - m, -80.0))        # EUP transcendental

    if k == 1:
        s = jnp.sum(e, axis=-1, keepdims=True)    # (TR, 1)
    else:
        # Segment-sum + broadcast-back in one MXU matmul with a block-diagonal
        # 0/1 selector.  Compensated hi/lo split keeps ~f32 accuracy even when
        # the MXU evaluates the f32 matmul at bf16 operand precision.
        shift = (w - 1).bit_length()              # log2(w); w is a power of two here
        row_seg = lax.broadcasted_iota(jnp.int32, (kw, kw), 0) >> shift
        col_seg = lax.broadcasted_iota(jnp.int32, (kw, kw), 1) >> shift
        sel = (row_seg == col_seg).astype(jnp.float32)   # exactly 0/1
        e_hi = e.astype(jnp.bfloat16).astype(jnp.float32)
        e_lo = e - e_hi
        s = (jnp.dot(e_hi, sel, preferred_element_type=jnp.float32)
             + jnp.dot(e_lo, sel, preferred_element_type=jnp.float32))

    inv = pl.reciprocal(s, approx=True)           # EUP vrcp (free VLIW slot)
    inv = inv * (2.0 - s * inv)                   # one Newton step -> ~f32 exact
    o_ref[...] = (e * inv).astype(o_ref.dtype)    # in-kernel downcast


# ----------------------------------------------------------------------------
# Wrapper: tiling / packing / padding decisions
# ----------------------------------------------------------------------------
def pallas_softmax_lastdim(x: jax.Array) -> jax.Array:
    """Softmax over the last axis, computed by a tiled, lane-dense Pallas kernel."""
    orig_shape = x.shape
    orig_dtype = x.dtype
    w = int(orig_shape[-1])
    rows = 1
    for d in orig_shape[:-1]:
        rows *= int(d)

    # Lane-dense packing: fold k consecutive rows into the 128-wide lane axis.
    if w % 128 == 0:
        k = 1                         # already lane-dense
    elif 128 % w == 0:
        k = 128 // w                  # e.g. w=16 -> k=8, packed width = 128
    else:
        k = 1                         # fallback: last dim = full extent (legal)
    kw = k * w

    # Tile sizing: ~512 KiB of f32 per block -> 4 double-buffered blocks stay
    # well under default scoped VMEM on v5e (16 MiB) and v6e/v7x (32 MiB).
    tr = max(16, min(2048, _round_up((512 * 1024) // (kw * 4), 16)))
    packed_rows = _round_up(rows, k) // k
    tr = min(tr, _round_up(packed_rows, 16))
    packed_rows_pad = _round_up(packed_rows, tr)
    rows_pad = packed_rows_pad * k

    x2d = x.reshape(rows, w)
    if rows_pad != rows:
        # Padded rows are independent, harmless softmax segments (all zeros).
        x2d = jnp.pad(x2d, ((0, rows_pad - rows), (0, 0)))
    xp = x2d.reshape(packed_rows_pad, kw)   # free row-major reshape, original dtype

    out = pl.pallas_call(
        functools.partial(_softmax_kernel, k=k, w=w),
        out_shape=jax.ShapeDtypeStruct((packed_rows_pad, kw), orig_dtype),
        grid_spec=pl.GridSpec(
            grid=(packed_rows_pad // tr,),
            in_specs=[pl.BlockSpec((tr, kw), lambda i: (i, 0))],
            out_specs=pl.BlockSpec((tr, kw), lambda i: (i, 0)),
        ),
        compiler_params=pltpu.CompilerParams(
            dimension_semantics=("parallel",),
        ),
    )(xp)

    out2d = out.reshape(rows_pad, w)
    if rows_pad != rows:
        out2d = out2d[:rows]
    return out2d.reshape(orig_shape)


# ----------------------------------------------------------------------------
# WrapFunction: faithful port of the PyTorch module (pure delegation, no params)
# ----------------------------------------------------------------------------
class WrapFunction:
    def __init__(self, wrapped_function):
        self.wrapped_function = wrapped_function

    def __call__(self, *args, **kwargs):
        return self.wrapped_function(*args, **kwargs)

    # alias to mirror nn.Module.forward
    forward = __call__


if __name__ == "__main__":
    key = jax.random.PRNGKey(0)
    # Small NCHW input consistent with a typical mmcv ONNX test tensor.
    x = jax.random.normal(key, (2, 4, 16, 16), dtype=jnp.float32)

    model = WrapFunction(pallas_softmax_lastdim)
    out = jax.block_until_ready(model(x))

    # Cross-check against plain-JAX reference (same semantics as torch softmax dim=-1).
    ref = jax.nn.softmax(x, axis=-1)
    assert out.shape == x.shape and out.dtype == x.dtype
    err = float(jnp.max(jnp.abs(out - ref)))
    assert err < 1e-4, f"max abs error {err}"

    print("KERNEL_OK")
</pallas_src>

<mosaic_0001>
module attributes {stable_mosaic.version = 11 : i64} {
  func.func @_softmax_kernel(%arg0: i32, %arg1: memref<16x128xf32, #tpu.memory_space<vmem>>, %arg2: memref<16x128xf32, #tpu.memory_space<vmem>>) attributes {dimension_semantics = [#tpu.dimension_semantics<parallel>], iteration_bounds = array<i64: 1>, scalar_prefetch = 0 : i64, scratch_operands = 0 : i64, tpu.core_type = #tpu.core_type<tc>, window_params = [{transform_indices = @transform_0, window_bounds = array<i64: 16, 128>}, {transform_indices = @transform_1, window_bounds = array<i64: 16, 128>}]} {
    %c0 = arith.constant 0 : index
    %c0_0 = arith.constant 0 : index
    %0 = vector.load %arg1[%c0, %c0_0] : memref<16x128xf32, #tpu.memory_space<vmem>>, vector<16x128xf32>
    %cst = arith.constant dense<0xFF800000> : vector<16xf32>
    %1 = vector.multi_reduction <maximumf>, %0, %cst [1] : vector<16x128xf32> to vector<16xf32>
    %2 = vector.shape_cast %1 : vector<16xf32> to vector<16x1xf32>
    %3 = vector.broadcast %2 : vector<16x1xf32> to vector<16x128xf32>
    %4 = arith.subf %0, %3 : vector<16x128xf32>
    %cst_1 = arith.constant -8.000000e+01 : f32
    %5 = vector.broadcast %cst_1 : f32 to vector<16x128xf32>
    %6 = arith.maximumf %4, %5 : vector<16x128xf32>
    %7 = math.exp %6 : vector<16x128xf32>
    %8 = tpu.iota {dimensions = array<i32: 0>} : vector<128x128xi32>
    %c4_i32 = arith.constant 4 : i32
    %9 = vector.broadcast %c4_i32 : i32 to vector<128x128xi32>
    %10 = arith.shrsi %8, %9 : vector<128x128xi32>
    %11 = tpu.iota {dimensions = array<i32: 1>} : vector<128x128xi32>
    %c4_i32_2 = arith.constant 4 : i32
    %12 = vector.broadcast %c4_i32_2 : i32 to vector<128x128xi32>
    %13 = arith.shrsi %11, %12 : vector<128x128xi32>
    %14 = arith.cmpi eq, %10, %13 : vector<128x128xi32>
    %15 = arith.extui %14 : vector<128x128xi1> to vector<128x128xi32>
    %16 = arith.sitofp %15 : vector<128x128xi32> to vector<128x128xf32>
    %17 = arith.truncf %7 : vector<16x128xf32> to vector<16x128xbf16>
    %18 = arith.extf %17 : vector<16x128xbf16> to vector<16x128xf32>
    %19 = arith.subf %7, %18 : vector<16x128xf32>
    %cst_3 = arith.constant dense<0.000000e+00> : vector<16x128xf32>
    %20 = tpu.matmul %18, %16, %cst_3 {dimension_numbers = #tpu.dot_dimension_numbers<[1], [0], [0], [1], [0, 0, 1, 1], [], []>} : vector<16x128xf32>, vector<128x128xf32>, vector<16x128xf32> -> vector<16x128xf32>
    %cst_4 = arith.constant dense<0.000000e+00> : vector<16x128xf32>
    %21 = tpu.matmul %19, %16, %cst_4 {dimension_numbers = #tpu.dot_dimension_numbers<[1], [0], [0], [1], [0, 0, 1, 1], [], []>} : vector<16x128xf32>, vector<128x128xf32>, vector<16x128xf32> -> vector<16x128xf32>
    %22 = arith.addf %20, %21 : vector<16x128xf32>
    %23 = tpu.reciprocal %22 {approx = true} : vector<16x128xf32> -> vector<16x128xf32>
    %24 = arith.mulf %22, %23 : vector<16x128xf32>
    %cst_5 = arith.constant 2.000000e+00 : f32
    %25 = vector.broadcast %cst_5 : f32 to vector<16x128xf32>
    %26 = arith.subf %25, %24 : vector<16x128xf32>
    %27 = arith.mulf %23, %26 : vector<16x128xf32>
    %28 = arith.mulf %7, %27 : vector<16x128xf32>
    %c0_6 = arith.constant 0 : index
    %c0_7 = arith.constant 0 : index
    %29 = vector.load %arg2[%c0_6, %c0_7] : memref<16x128xf32, #tpu.memory_space<vmem>>, vector<16x128xf32>
    tpu.vector_store %arg2[%c0_6, %c0_7], %28 {strides = array<i32>} : memref<16x128xf32, #tpu.memory_space<vmem>>, vector<16x128xf32>,
    return
  }
  func.func @transform_0(%arg0: i32) -> (i32, i32) {
    %c0_i32 = arith.constant 0 : i32
    %c0_i32_0 = arith.constant 0 : i32
    return %arg0, %c0_i32 : i32, i32
  }
  func.func @transform_1(%arg0: i32) -> (i32, i32) {
    %c0_i32 = arith.constant 0 : i32
    %c0_i32_0 = arith.constant 0 : i32
    return %arg0, %c0_i32 : i32, i32
  }
}

</mosaic_0001>

<bundles_post_ra>
// kernel: tpu_custom_call.1
= control target key start
LH: loop header
LB: loop body
LE: loop exit
PB: predicated region body
PF: predicated region fallthrough
CT: control target
= control target key end

     0   :  { %6 = vsyncpa [#allocation3], 0  ;;  %s534_s0 = inlined_call_operand.hbm [shape: f32[16,128], index: 0, kind: input, shape index: {}]   ;;  %s535_s1 = inlined_call_operand.hbm [shape: f32[16,128], index: 1, kind: output, shape index: {}]  }
   0x1   :  { %7 = vsyncpa [#allocation4], 0  ;;  %s12_s8 = sshll.u32 %s534_s0, 4  ;;  %s351_s9 = smov [#allocation2]   ;;  %s13_s8 = int_to_ptr.hbm [resolvable:$true] %s12_s8 }
   0x2   :  { %s14_s10 = sshll.u32 %s351_s9, 4  ;;  %s352_s11 = smov 128   ;;  %s15_s10 = int_to_ptr.vmem [resolvable:$true] %s14_s10 }
   0x3   :  { %s353_s12 = smov 8  }
   0x4   :  { %20 = dma.hbm_to_vmem [thread:$0]  %s13_s8, 256, %s15_s10, [#allocation3], %s352_s11, %s352_s11, %s353_s12  }
   0x5   :  { %347 = dma.done.wait [#allocation3], 256  }
   0x6   :  { %348 = vsyncadd [#allocation3], 4294967040  ;;  %v39_v0 = vlaneseq  ;;  %v381_v12 = vld [vmem:[#allocation2 + $0x8] sm:$0xff]  ;;  %v354_v16 = vmov 1.0   ;;  %v418_v22 = vld [vmem:[#allocation2] sm:$0xff]  ;;  %s355_s0 = smov [#allocation5]  }
   0x7   :  { %29 = vmax.xlane.f32.xlu0 %v381_v12  ;;  %s191_s13 = sshll.u32 %s355_s0, 4  ;;  %s193_s16 = sshll.u32 %s535_s1, 4  ;;  %s192_s13 = int_to_ptr.vmem [resolvable:$true] %s191_s13  ;;  %s194_s16 = int_to_ptr.hbm [resolvable:$true] %s193_s16 }
   0x8   :  { %v372_v1 = vshrl.u32 %v39_v0, 7  ;;  %v73_v2 = vand.u32 127, %v39_v0 }
   0xa   :  { %v55_v3 = vadd.s32 120, %v372_v1  ;;  %v375_v4 = vshra.s32 %v73_v2, 4  ;;  %v54_v5 = vadd.s32 112, %v372_v1  ;;  %v53_v6 = vadd.s32 104, %v372_v1 }
   0xb   :  { %v52_v7 = vadd.s32 96, %v372_v1  ;;  %v51_v11 = vadd.s32 88, %v372_v1  ;;  %v50_v15 = vadd.s32 80, %v372_v1  ;;  %v49_v19 = vadd.s32 72, %v372_v1 }
   0xc   :  { %v71_v8 = vshra.s32 %v55_v3, 4  ;;  %v70_v9 = vshra.s32 %v54_v5, 4  ;;  %v69_v10 = vshra.s32 %v53_v6, 4  ;;  %v48_v25 = vadd.s32 64, %v372_v1 }
   0xd   :  { %v68_v14 = vshra.s32 %v52_v7, 4  ;;  %v67_v18 = vshra.s32 %v51_v11, 4  ;;  %v66_v21 = vshra.s32 %v50_v15, 4  ;;  %v65_v24 = vshra.s32 %v49_v19, 4 }
   0xe   :  { %vm90_vm0 = vcmp.eq.s32.totalorder %v71_v8, %v375_v4  ;;  %vm386_vm1 = vcmp.eq.s32.totalorder %v70_v9, %v375_v4  ;;  %vm394_vm2 = vcmp.eq.s32.totalorder %v69_v10, %v375_v4  ;;  %v64_v26 = vshra.s32 %v48_v25, 4 }
   0xf   :  { %270 = vmatpush.msk.msra.mxu3 %vm90_vm0, %v354_v16  ;;  %254 = vmatpush.msk.msra.mxu2 %vm90_vm0, %v354_v16  ;;  %vm408_vm3 = vcmp.eq.s32.totalorder %v68_v14, %v375_v4  ;;  %vm427_vm4 = vcmp.eq.s32.totalorder %v67_v18, %v375_v4  ;;  %vm85_vm5 = vcmp.eq.s32.totalorder %v66_v21, %v375_v4  ;;  %v47_v27 = vadd.s32 56, %v372_v1 }
  0x10   :  { %238 = vmatpush.msk.msra.mxu1 %vm90_vm0, %v354_v16  ;;  %222 = vmatpush.msk.msra.mxu0 %vm90_vm0, %v354_v16  ;;  %vm84_vm6 = vcmp.eq.s32.totalorder %v65_v24, %v375_v4  ;;  %vm83_vm7 = vcmp.eq.s32.totalorder %v64_v26, %v375_v4  ;;  %v46_v29 = vadd.s32 48, %v372_v1  ;;  %v45_v31 = vadd.s32 40, %v372_v1 }
  0x11   :  { %271 = vmatpush.msk.msra.mxu3 %vm386_vm1, %v354_v16  ;;  %255 = vmatpush.msk.msra.mxu2 %vm386_vm1, %v354_v16  ;;  %v63_v28 = vshra.s32 %v47_v27, 4  ;;  %v44_v33 = vadd.s32 32, %v372_v1  ;;  %v43_v35 = vadd.s32 24, %v372_v1  ;;  %v42_v37 = vadd.s32 16, %v372_v1 }
  0x12   :  { %239 = vmatpush.msk.msra.mxu1 %vm386_vm1, %v354_v16  ;;  %223 = vmatpush.msk.msra.mxu0 %vm386_vm1, %v354_v16  ;;  %v62_v30 = vshra.s32 %v46_v29, 4  ;;  %v61_v32 = vshra.s32 %v45_v31, 4  ;;  %v41_v39 = vadd.s32 8, %v372_v1  ;;  %v56_v41 = vshra.s32 %v372_v1, 4 }
  0x13   :  { %272 = vmatpush.msk.msra.mxu3 %vm394_vm2, %v354_v16  ;;  %256 = vmatpush.msk.msra.mxu2 %vm394_vm2, %v354_v16  ;;  %vm82_vm8 = vcmp.eq.s32.totalorder %v63_v28, %v375_v4  ;;  %v60_v34 = vshra.s32 %v44_v33, 4  ;;  %v59_v36 = vshra.s32 %v43_v35, 4  ;;  %v58_v38 = vshra.s32 %v42_v37, 4 }
  0x14   :  { %240 = vmatpush.msk.msra.mxu1 %vm394_vm2, %v354_v16  ;;  %224 = vmatpush.msk.msra.mxu0 %vm394_vm2, %v354_v16  ;;  %vm81_vm9 = vcmp.eq.s32.totalorder %v62_v30, %v375_v4  ;;  %vm80_vm10 = vcmp.eq.s32.totalorder %v61_v32, %v375_v4  ;;  %v57_v40 = vshra.s32 %v41_v39, 4  ;;  %vm75_vm15 = vcmp.eq.s32.totalorder %v56_v41, %v375_v4 }
  0x15   :  { %273 = vmatpush.msk.msra.mxu3 %vm408_vm3, %v354_v16  ;;  %257 = vmatpush.msk.msra.mxu2 %vm408_vm3, %v354_v16  ;;  %vm79_vm11 = vcmp.eq.s32.totalorder %v60_v34, %v375_v4  ;;  %vm78_vm12 = vcmp.eq.s32.totalorder %v59_v36, %v375_v4  ;;  %vm77_vm13 = vcmp.eq.s32.totalorder %v58_v38, %v375_v4 }
  0x16   :  { %27 = vmax.xlane.f32.xlu0 %v418_v22  ;;  %241 = vmatpush.msk.msra.mxu1 %vm408_vm3, %v354_v16  ;;  %vm76_vm14 = vcmp.eq.s32.totalorder %v57_v40, %v375_v4 }
  0x17   :  { %274 = vmatpush.msk.msra.mxu3 %vm427_vm4, %v354_v16  ;;  %258 = vmatpush.msk.msra.mxu2 %vm427_vm4, %v354_v16 }
  0x18   :  { %225 = vmatpush.msk.msra.mxu0 %vm408_vm3, %v354_v16  ;;  %242 = vmatpush.msk.msra.mxu1 %vm427_vm4, %v354_v16 }
  0x19   :  { %275 = vmatpush.msk.msra.mxu3 %vm85_vm5, %v354_v16  ;;  %259 = vmatpush.msk.msra.mxu2 %vm85_vm5, %v354_v16 }
  0x1a   :  { %226 = vmatpush.msk.msra.mxu0 %vm427_vm4, %v354_v16  ;;  %243 = vmatpush.msk.msra.mxu1 %vm85_vm5, %v354_v16 }
  0x1b   :  { %276 = vmatpush.msk.msra.mxu3 %vm84_vm6, %v354_v16  ;;  %260 = vmatpush.msk.msra.mxu2 %vm84_vm6, %v354_v16 }
  0x1c   :  { %227 = vmatpush.msk.msra.mxu0 %vm85_vm5, %v354_v16  ;;  %244 = vmatpush.msk.msra.mxu1 %vm84_vm6, %v354_v16 }
  0x1d   :  { %277 = vmatpush.msk.msra.mxu3 %vm83_vm7, %v354_v16  ;;  %261 = vmatpush.msk.msra.mxu2 %vm83_vm7, %v354_v16 }
  0x1e   :  { %228 = vmatpush.msk.msra.mxu0 %vm84_vm6, %v354_v16  ;;  %245 = vmatpush.msk.msra.mxu1 %vm83_vm7, %v354_v16 }
  0x1f   :  { %278 = vmatpush.msk.msra.mxu3 %vm82_vm8, %v354_v16  ;;  %262 = vmatpush.msk.msra.mxu2 %vm82_vm8, %v354_v16 }
  0x20   :  { %229 = vmatpush.msk.msra.mxu0 %vm83_vm7, %v354_v16  ;;  %246 = vmatpush.msk.msra.mxu1 %vm82_vm8, %v354_v16 }
  0x21   :  { %279 = vmatpush.msk.msra.mxu3 %vm81_vm9, %v354_v16  ;;  %263 = vmatpush.msk.msra.mxu2 %vm81_vm9, %v354_v16 }
  0x22   :  { %230 = vmatpush.msk.msra.mxu0 %vm82_vm8, %v354_v16  ;;  %247 = vmatpush.msk.msra.mxu1 %vm81_vm9, %v354_v16 }
  0x23   :  { %280 = vmatpush.msk.msra.mxu3 %vm80_vm10, %v354_v16  ;;  %264 = vmatpush.msk.msra.mxu2 %vm80_vm10, %v354_v16 }
  0x24   :  { %231 = vmatpush.msk.msra.mxu0 %vm81_vm9, %v354_v16  ;;  %248 = vmatpush.msk.msra.mxu1 %vm80_vm10, %v354_v16 }
  0x25   :  { %281 = vmatpush.msk.msra.mxu3 %vm79_vm11, %v354_v16  ;;  %265 = vmatpush.msk.msra.mxu2 %vm79_vm11, %v354_v16 }
  0x26   :  { %232 = vmatpush.msk.msra.mxu0 %vm80_vm10, %v354_v16  ;;  %249 = vmatpush.msk.msra.mxu1 %vm79_vm11, %v354_v16 }
  0x27   :  { %282 = vmatpush.msk.msra.mxu3 %vm78_vm12, %v354_v16  ;;  %266 = vmatpush.msk.msra.mxu2 %vm78_vm12, %v354_v16 }
  0x28   :  { %233 = vmatpush.msk.msra.mxu0 %vm79_vm11, %v354_v16  ;;  %250 = vmatpush.msk.msra.mxu1 %vm78_vm12, %v354_v16 }
  0x29   :  { %283 = vmatpush.msk.msra.mxu3 %vm77_vm13, %v354_v16  ;;  %267 = vmatpush.msk.msra.mxu2 %vm77_vm13, %v354_v16 }
  0x2a   :  { %234 = vmatpush.msk.msra.mxu0 %vm78_vm12, %v354_v16  ;;  %251 = vmatpush.msk.msra.mxu1 %vm77_vm13, %v354_v16 }
  0x2b   :  { %284 = vmatpush.msk.msra.mxu3 %vm76_vm14, %v354_v16  ;;  %268 = vmatpush.msk.msra.mxu2 %vm76_vm14, %v354_v16 }
  0x2c   :  { %235 = vmatpush.msk.msra.mxu0 %vm77_vm13, %v354_v16  ;;  %252 = vmatpush.msk.msra.mxu1 %vm76_vm14, %v354_v16 }
  0x2d   :  { %285 = vmatpush.msk.msra.mxu3 %vm75_vm15, %v354_v16  ;;  %269 = vmatpush.msk.msra.mxu2 %vm75_vm15, %v354_v16 }
  0x2e   :  { %236 = vmatpush.msk.msra.mxu0 %vm76_vm14, %v354_v16  ;;  %253 = vmatpush.msk.msra.mxu1 %vm75_vm15, %v354_v16 }
  0x30   :  { %237 = vmatpush.msk.msra.mxu0 %vm75_vm15, %v354_v16 }
  0x7a   :  { %v30_v42 = vpop.xlane.xlu0 %29 }
  0x7b   :  { %v32_v43 = vsub.f32 %v381_v12, %v30_v42 }
  0x7d   :  { %v34_v44 = vmax.f32 %v32_v43, -80.0 }
  0x7f   :  { %v37_v45 = vmul.f32 1.442695, %v34_v44 }
  0x81   :  { %291 = vpow2.f32 %v37_v45 }
  0x87   :  { %v292_v49 = vpop.eup %291 }
  0x88   :  { %v124_v51 = vpack.c.bf16 %v292_v49, %v292_v49 }
  0x89   :  { %v28_v46 = vpop.xlane.xlu0 %27 }
  0x8a   :  { %v31_v47 = vsub.f32 %v418_v22, %v28_v46  ;;  %v126_v52 = vunpack.c.l.bf16 %v124_v51 }
  0x8c   :  { %v33_v48 = vmax.f32 %v31_v47, -80.0  ;;  %171 = vmatmul.f32.vlgmr.msra.gmra.mxu3 %v126_v52  ;;  %v128_v53 = vsub.f32 %v292_v49, %v126_v52 }
  0x8e   :  { %v35_v50 = vmul.f32 1.442695, %v33_v48  ;;  %148 = vmatmul.f32.vlgmr.msra.gmra.mxu2 %v128_v53 }
  0x90   :  { %293 = vpow2.f32 %v35_v50 }
  0x96   :  { %v294_v54 = vpop.eup %293 }
  0x97   :  { %v123_v55 = vpack.c.bf16 %v294_v54, %v294_v54 }
  0x99   :  { %v125_v56 = vunpack.c.l.bf16 %v123_v55 }
  0x9b   :  { %168 = vmatmul.f32.vlgmr.msra.gmra.mxu1 %v125_v56  ;;  %v127_v57 = vsub.f32 %v294_v54, %v125_v56 }
  0x9d   :  { %145 = vmatmul.f32.vlgmr.msra.gmra.mxu0 %v127_v57 }
 0x10f   :  { %v172_v58 = vpop.f32.mrf.mxu3 }
 0x111   :  { %v149_v59 = vpop.f32.mrf.mxu2 }
 0x112   :  { %v173_v60 = vadd.f32 %v172_v58, %v149_v59 }
 0x114   :  { %295 = vrcp.f32 %v173_v60 }
 0x118   :  { %v169_v61 = vpop.f32.mrf.mxu1 }
 0x11a   :  { %v146_v62 = vpop.f32.mrf.mxu0  ;;  %v296_v0 = vpop.eup %295 }
 0x11b   :  { %v170_v63 = vadd.f32 %v169_v61, %v146_v62  ;;  %v178_v1 = vmul.f32 %v296_v0, %v173_v60 }
 0x11d   :  { %297 = vrcp.f32 %v170_v63  ;;  %v180_v3 = vsub.f32 2.0, %v178_v1 }
 0x11f   :  { %v182_v5 = vmul.f32 %v296_v0, %v180_v3 }
 0x121   :  { %v184_v7 = vmul.f32 %v292_v49, %v182_v5 }
 0x123   :  { %v298_v2 = vpop.eup %297  ;;  %186 = vst [vmem:[#allocation5 + $0x8] sm:$0xff] %v184_v7 }
 0x124   :  { %v177_v4 = vmul.f32 %v298_v2, %v170_v63 }
 0x126   :  { %v179_v6 = vsub.f32 2.0, %v177_v4 }
 0x128   :  { %v181_v8 = vmul.f32 %v298_v2, %v179_v6 }
 0x12a   :  { %v183_v9 = vmul.f32 %v294_v54, %v181_v8 }
 0x12c   :  { %185 = vst [vmem:[#allocation5] sm:$0xff] %v183_v9 }
 0x12d   :  { %199 = dma.vmem_to_hbm [thread:$0]  %s192_s13, 256, %s194_s16, [#allocation4], %s352_s11, %s352_s11, %s353_s12  }
 0x12e   :  { %349 = dma.done.wait [#allocation4], 256  }
 0x12f   :  { %350 = vsyncadd [#allocation4], 4294967040 }
 0x130   :  { %204 = vsyncpa [#allocation3], 1 }
 0x131   :  { %205 = vsyncpa [#allocation4], 1 }

</bundles_post_ra>
